<compile_context>
chip_gen: v7x
topology: tpu7x:2x2x1
jax: 0.10.0
libtpu: 0.0.40
codegen_flags: <defaults>
</compile_context>

<pallas_src>
import functools
import math

import jax
import jax.numpy as jnp
from jax.experimental import pallas as pl
from jax.experimental.pallas import tpu as pltpu

_MIB = 1024 * 1024


# --------------------------------------------------------------------------- #
# Small helpers (sizing / hardware query)
# --------------------------------------------------------------------------- #
def _vmem_capacity_bytes():
    try:
        return int(pltpu.get_tpu_info().vmem_capacity_bytes)
    except Exception:
        return 64 * _MIB          # conservative (v7x-sized) fallback


def _round_up(a, b):
    return -(-a // b) * b


def _sublane_tile(itemsize):
    # (8,128) tiles for f32, (16,128) for bf16, (32,128) for int8/fp8.
    return max(8, 32 // itemsize)


def _block_vmem_bytes(lead, sub, lane, itemsize):
    """VMEM footprint of a (lead, sub, lane) block after (sublane, 128) tiling."""
    return (lead
            * _round_up(max(sub, 1), _sublane_tile(itemsize))
            * _round_up(max(lane, 1), 128)
            * itemsize)


# --------------------------------------------------------------------------- #
# Gate computation on the pooled (per-channel) vector
# --------------------------------------------------------------------------- #
def _channel_conv_sublane(m, w_ref, alpha_ref):
    """Gate scale with channels on the sublane axis.

    m: (nb, C, 1) f32 pooled means.  Returns (nb, C, 1) f32
    scale = 1 + alpha * sigmoid(conv1d(m, w, zero-padding k//2)).
    """
    nb, C, _ = m.shape
    k = w_ref.shape[0]
    pad = k // 2
    if pad > 0:
        z = jnp.zeros((nb, pad, 1), jnp.float32)
        m_pad = jnp.concatenate([z, m, z], axis=1)           # (nb, C + 2*pad, 1)
    else:
        m_pad = m
    conv = jnp.zeros((nb, C, 1), jnp.float32)
    for j in range(k):                                       # k tiny & static
        conv = conv + w_ref[j] * m_pad[:, j:j + C, :]
    return 1.0 + alpha_ref[0] * jax.nn.sigmoid(conv)


def _channel_conv_lane(m, w_ref, alpha_ref):
    """Same gate but with channels on the lane axis: m is (nb, 1, C) f32."""
    nb, _, C = m.shape
    k = w_ref.shape[0]
    pad = k // 2
    lane = jax.lax.broadcasted_iota(jnp.int32, (nb, 1, C), 2)
    conv = jnp.zeros((nb, 1, C), jnp.float32)
    for j in range(k):
        off = j - pad                                        # tap reads m[c + off]
        if off == 0:
            tap = m
        else:
            # rolled[c] = m[(c + off) % C]; mask the wrapped lanes -> zero padding.
            rolled = pltpu.roll(m, shift=(-off) % C, axis=2)
            valid = (lane + off >= 0) & (lane + off < C)
            tap = jnp.where(valid, rolled, 0.0)
        conv = conv + w_ref[j] * tap
    return 1.0 + alpha_ref[0] * jax.nn.sigmoid(conv)


# --------------------------------------------------------------------------- #
# One-pass kernels (whole image(s) per grid step)
# --------------------------------------------------------------------------- #
def _eca_kernel_cs(w_ref, alpha_ref, x_ref, o_ref):
    # Channels on sublanes: x_ref / o_ref are (nb, C, HW) blocks.
    m = jnp.mean(x_ref[...], axis=2, keepdims=True, dtype=jnp.float32)   # (nb, C, 1)
    scale = _channel_conv_sublane(m, w_ref, alpha_ref)                   # (nb, C, 1)
    # Second read of x_ref (don't hold the whole block as one value); multiply
    # in f32 and cast once at the store.
    o_ref[...] = (x_ref[...].astype(jnp.float32) * scale).astype(o_ref.dtype)


def _eca_kernel_cl(w_ref, alpha_ref, x_ref, o_ref):
    # Channels on lanes: x_ref / o_ref are (nb, HW, C) blocks (lane-dense stores
    # when C % 128 == 0).
    m = jnp.mean(x_ref[...], axis=1, keepdims=True, dtype=jnp.float32)   # (nb, 1, C)
    scale = _channel_conv_lane(m, w_ref, alpha_ref)                      # (nb, 1, C)
    o_ref[...] = (x_ref[...].astype(jnp.float32) * scale).astype(o_ref.dtype)


# --------------------------------------------------------------------------- #
# Two-pass chunked kernels (single image too large for one block)
# --------------------------------------------------------------------------- #
def _eca_pool_kernel(x_ref, mean_ref, *, hw_total):
    # x_ref: (1, C, hw_chunk); mean_ref: (1, C, 1) f32 accumulator over HW chunks.
    h = pl.program_id(1)
    chunk = x_ref.shape[2]

    @pl.when(h == 0)
    def _():
        mean_ref[...] = jnp.zeros_like(mean_ref)

    # Mask the (possibly padded) remainder chunk so garbage never enters the sum.
    lane = jax.lax.broadcasted_iota(jnp.int32, x_ref.shape, 2)
    valid = (h * chunk + lane) < hw_total
    xm = jnp.where(valid, x_ref[...], jnp.zeros((), x_ref.dtype))
    mean_ref[...] += jnp.sum(xm, axis=2, keepdims=True, dtype=jnp.float32)

    @pl.when(h == pl.num_programs(1) - 1)
    def _():
        mean_ref[...] = mean_ref[...] * jnp.float32(1.0 / hw_total)


def _eca_apply_kernel(w_ref, alpha_ref, mean_ref, x_ref, o_ref):
    # mean_ref: (1, C, 1) f32 pooled means; x_ref / o_ref: (1, C, hw_chunk).
    scale = _channel_conv_sublane(mean_ref[...], w_ref, alpha_ref)       # (1, C, 1)
    o_ref[...] = (x_ref[...].astype(jnp.float32) * scale).astype(o_ref.dtype)


# --------------------------------------------------------------------------- #
# Wrapper
# --------------------------------------------------------------------------- #
def eca_forward(x, conv_w, alpha, *, lane_axis="auto",
                block_bytes_target=None, max_block_bytes=None):
    """ECA forward.  x: (N, C, H, W); conv_w: (k,); alpha: (1,)."""
    N, C, H, W = x.shape
    HW = H * W
    itemsize = x.dtype.itemsize
    conv_w = conv_w.astype(jnp.float32).reshape(-1)
    alpha = alpha.astype(jnp.float32).reshape(-1)

    # ---- generation-aware budgets -------------------------------------------
    vmem_cap = _vmem_capacity_bytes()
    vmem_budget = (3 * vmem_cap) // 4          # ~48 MiB on v7x, ~96 MiB on v5e/v6e
    two_tensorcores = vmem_cap <= 64 * _MIB    # v7x heuristic (2 TCs per chip)
    if block_bytes_target is None:
        block_bytes_target = 8 * _MIB          # 4-8 MiB amortizes ~0.35us/step cost
    if max_block_bytes is None:
        # 2x-buffered input + 2x-buffered output + f32 temporaries + slack.
        max_block_bytes = vmem_budget // 8
    block_target = max(1, min(block_bytes_target, max_block_bytes))

    # ---- lane-axis choice ----------------------------------------------------
    if lane_axis == "auto":
        if HW % 128 == 0:
            lane_axis = "hw"
        elif C % 128 == 0:
            lane_axis = "c"                    # lane-dense stores for 7x7 / 14x14
        else:
            lane_axis = "hw"

    x2 = x.reshape(N, C, HW)
    per_img_cs = _block_vmem_bytes(1, C, HW, itemsize)
    per_img_cl = _block_vmem_bytes(1, HW, C, itemsize)
    per_img = per_img_cl if lane_axis == "c" else per_img_cs
    compiler = lambda sem: pltpu.CompilerParams(      # noqa: E731
        dimension_semantics=sem, vmem_limit_bytes=int(vmem_budget))

    if per_img <= max_block_bytes:
        # ----------------- one-pass path: nb images per grid step ------------
        nb = int(max(1, min(N, block_target // per_img)))
        if two_tensorcores and N > 1:
            nb = min(nb, pl.cdiv(N, 2))        # keep both v7x TensorCores busy
        grid = (pl.cdiv(N, nb),)               # padded remainder block: per-image
                                               # work is independent, OOB outputs
                                               # are never written back.
        if lane_axis == "c":
            # Channels on lanes.  NOTE: for NCHW inputs this transpose (and the
            # inverse on the output) is an XLA copy; a channels-last producer
            # gets this lane-dense layout for free.
            x_k = jnp.swapaxes(x2, 1, 2)                       # (N, HW, C)
            out_k = pl.pallas_call(
                _eca_kernel_cl,
                out_shape=jax.ShapeDtypeStruct((N, HW, C), x.dtype),
                grid_spec=pl.GridSpec(
                    grid=grid,
                    in_specs=[
                        pl.BlockSpec(memory_space=pltpu.MemorySpace.SMEM),   # conv_w
                        pl.BlockSpec(memory_space=pltpu.MemorySpace.SMEM),   # alpha
                        pl.BlockSpec((nb, HW, C), lambda n: (n, 0, 0)),
                    ],
                    out_specs=pl.BlockSpec((nb, HW, C), lambda n: (n, 0, 0)),
                ),
                compiler_params=compiler(("parallel",)),
            )(conv_w, alpha, x_k)
            out2 = jnp.swapaxes(out_k, 1, 2)
        else:
            out2 = pl.pallas_call(
                _eca_kernel_cs,
                out_shape=jax.ShapeDtypeStruct((N, C, HW), x.dtype),
                grid_spec=pl.GridSpec(
                    grid=grid,
                    in_specs=[
                        pl.BlockSpec(memory_space=pltpu.MemorySpace.SMEM),   # conv_w
                        pl.BlockSpec(memory_space=pltpu.MemorySpace.SMEM),   # alpha
                        pl.BlockSpec((nb, C, HW), lambda n: (n, 0, 0)),
                    ],
                    out_specs=pl.BlockSpec((nb, C, HW), lambda n: (n, 0, 0)),
                ),
                compiler_params=compiler(("parallel",)),
            )(conv_w, alpha, x2)
        return out2.reshape(N, C, H, W)

    # ----------------- chunked two-pass path (single image too big) ----------
    # Pass 1 streams lane-dense HW chunks and accumulates the per-channel mean;
    # pass 2 re-streams the chunks and applies the gate.  Costs 1.5x HBM traffic
    # but keeps DMA/compute overlap and a bounded VMEM footprint (a grid=1
    # whole-image kernel has zero overlap and can exceed v7x's 64 MiB VMEM).
    col_bytes = _round_up(C, _sublane_tile(itemsize)) * itemsize
    hw_chunk = max(128, (block_target // max(col_bytes, 1)) // 128 * 128)
    hw_chunk = int(min(hw_chunk, _round_up(HW, 128)))
    n_chunks = int(pl.cdiv(HW, hw_chunk))

    mean = pl.pallas_call(
        functools.partial(_eca_pool_kernel, hw_total=HW),
        out_shape=jax.ShapeDtypeStruct((N, C, 1), jnp.float32),
        grid_spec=pl.GridSpec(
            grid=(N, n_chunks),
            in_specs=[pl.BlockSpec((1, C, hw_chunk), lambda n, h: (n, 0, h))],
            out_specs=pl.BlockSpec((1, C, 1), lambda n, h: (n, 0, 0)),
        ),
        compiler_params=compiler(("parallel", "arbitrary")),
    )(x2)

    out2 = pl.pallas_call(
        _eca_apply_kernel,
        out_shape=jax.ShapeDtypeStruct((N, C, HW), x.dtype),
        grid_spec=pl.GridSpec(
            grid=(N, n_chunks),
            in_specs=[
                pl.BlockSpec(memory_space=pltpu.MemorySpace.SMEM),            # conv_w
                pl.BlockSpec(memory_space=pltpu.MemorySpace.SMEM),            # alpha
                pl.BlockSpec((1, C, 1), lambda n, h: (n, 0, 0)),              # mean
                pl.BlockSpec((1, C, hw_chunk), lambda n, h: (n, 0, h)),       # x
            ],
            out_specs=pl.BlockSpec((1, C, hw_chunk), lambda n, h: (n, 0, h)),
        ),
        compiler_params=compiler(("parallel", "parallel")),
    )(conv_w, alpha, mean, x2)
    return out2.reshape(N, C, H, W)


eca_forward_jit = jax.jit(
    eca_forward,
    static_argnames=("lane_axis", "block_bytes_target", "max_block_bytes"))


# --------------------------------------------------------------------------- #
# Pure-JAX reference (matches the PyTorch forward)
# --------------------------------------------------------------------------- #
def eca_reference(x, conv_w, alpha):
    N, C, H, W = x.shape
    k = conv_w.shape[0]
    pad = k // 2
    xf = x.astype(jnp.float32)
    m = xf.mean(axis=(2, 3))                                 # (N, C)
    m_pad = jnp.pad(m, ((0, 0), (pad, pad)))                 # (N, C + 2*pad)
    conv = sum(conv_w[j] * m_pad[:, j:j + C] for j in range(k))
    gate = jax.nn.sigmoid(conv)[:, :, None, None]            # (N, C, 1, 1)
    out = alpha[0] * (gate * xf) + xf
    return out.astype(x.dtype)


def _eca_kernel_size(c, b=1, gamma=2):
    t = int(abs((math.log(c, 2) + b) / gamma))
    return t if t % 2 else t + 1


# --------------------------------------------------------------------------- #
# Demo / self-test
# --------------------------------------------------------------------------- #
if __name__ == "__main__":
    key = jax.random.PRNGKey(0)

    def run_case(idx, N, C, H, W, **kwargs):
        k = _eca_kernel_size(C)
        kx, kw, ka = jax.random.split(jax.random.fold_in(key, idx), 3)
        x = jax.random.normal(kx, (N, C, H, W), dtype=jnp.float32)
        # PyTorch inits alpha to 0 (output == x); use nonzero values so the
        # gated path is actually exercised.
        conv_w = jax.random.normal(kw, (k,), dtype=jnp.float32) * 0.5
        alpha = jax.random.normal(ka, (1,), dtype=jnp.float32) * 0.5

        out = eca_forward_jit(x, conv_w, alpha, **kwargs)
        jax.block_until_ready(out)
        ref = eca_reference(x, conv_w, alpha)
        assert out.shape == (N, C, H, W)
        assert jnp.allclose(out, ref, atol=1e-5, rtol=1e-5), (
            f"case {idx}: mismatch vs reference, "
            f"max abs err = {jnp.max(jnp.abs(out - ref))}")

    # 1) Main case: HW % 128 == 0 -> one-pass, spatial on lanes (no transpose).
    run_case(0, N=4, C=16, H=16, W=16)
    # 2) Late-stage ECA shape: C % 128 == 0, HW = 7*7 -> one-pass, channels on
    #    lanes (lane-dense stores via the C-on-lanes kernel).
    run_case(1, N=2, C=128, H=7, W=7)
    # 3) Force the chunked two-pass path (used when one image exceeds the
    #    per-generation block cap), including a masked remainder HW chunk.
    run_case(2, N=2, C=16, H=18, W=18, max_block_bytes=16 * 1024)

    print("KERNEL_OK")
</pallas_src>

<mosaic_0001>
module attributes {stable_mosaic.version = 11 : i64} {
  func.func @_eca_kernel_cs(%arg0: i32, %arg1: memref<3xf32, #tpu.memory_space<smem>>, %arg2: memref<1xf32, #tpu.memory_space<smem>>, %arg3: memref<2x16x256xf32, #tpu.memory_space<vmem>>, %arg4: memref<2x16x256xf32, #tpu.memory_space<vmem>>) attributes {dimension_semantics = [#tpu.dimension_semantics<parallel>], iteration_bounds = array<i64: 2>, scalar_prefetch = 0 : i64, scratch_operands = 0 : i64, tpu.core_type = #tpu.core_type<tc>, window_params = [{transform_indices = @transform_0, window_bounds = array<i64: 3>}, {transform_indices = @transform_1, window_bounds = array<i64: 1>}, {transform_indices = @transform_2, window_bounds = array<i64: 2, 16, 256>}, {transform_indices = @transform_3, window_bounds = array<i64: 2, 16, 256>}]} {
    %c0 = arith.constant 0 : index
    %c0_0 = arith.constant 0 : index
    %c0_1 = arith.constant 0 : index
    %0 = vector.load %arg3[%c0, %c0_0, %c0_1] : memref<2x16x256xf32, #tpu.memory_space<vmem>>, vector<2x16x256xf32>
    %cst = arith.constant dense<0.000000e+00> : vector<2x16xf32>
    %1 = vector.multi_reduction <add>, %0, %cst [2] : vector<2x16x256xf32> to vector<2x16xf32>
    %2 = vector.shape_cast %1 : vector<2x16xf32> to vector<2x16x1xf32>
    %cst_2 = arith.constant 2.560000e+02 : f32
    %3 = vector.broadcast %cst_2 : f32 to vector<2x16x1xf32>
    %4 = arith.divf %2, %3 : vector<2x16x1xf32>
    %cst_3 = arith.constant 0.000000e+00 : f32
    %5 = vector.broadcast %cst_3 : f32 to vector<2x1x1xf32>
    %6 = tpu.concatenate %5, %4, %5 in 1 : vector<2x1x1xf32>, vector<2x16x1xf32>, vector<2x1x1xf32> -> vector<2x18x1xf32>
    %cst_4 = arith.constant 0.000000e+00 : f32
    %7 = vector.broadcast %cst_4 : f32 to vector<2x16x1xf32>
    %c0_5 = arith.constant 0 : index
    %8 = memref.load %arg1[%c0_5] : memref<3xf32, #tpu.memory_space<smem>>
    %9 = vector.extract_strided_slice %6 {offsets = [0, 0, 0], sizes = [2, 16, 1], strides = [1, 1, 1]} : vector<2x18x1xf32> to vector<2x16x1xf32>
    %10 = vector.broadcast %8 : f32 to vector<2x16x1xf32>
    %11 = arith.mulf %10, %9 : vector<2x16x1xf32>
    %12 = arith.addf %7, %11 : vector<2x16x1xf32>
    %c1 = arith.constant 1 : index
    %13 = memref.load %arg1[%c1] : memref<3xf32, #tpu.memory_space<smem>>
    %14 = vector.extract_strided_slice %6 {offsets = [0, 1, 0], sizes = [2, 16, 1], strides = [1, 1, 1]} : vector<2x18x1xf32> to vector<2x16x1xf32>
    %15 = vector.broadcast %13 : f32 to vector<2x16x1xf32>
    %16 = arith.mulf %15, %14 : vector<2x16x1xf32>
    %17 = arith.addf %12, %16 : vector<2x16x1xf32>
    %c2 = arith.constant 2 : index
    %18 = memref.load %arg1[%c2] : memref<3xf32, #tpu.memory_space<smem>>
    %19 = vector.extract_strided_slice %6 {offsets = [0, 2, 0], sizes = [2, 16, 1], strides = [1, 1, 1]} : vector<2x18x1xf32> to vector<2x16x1xf32>
    %20 = vector.broadcast %18 : f32 to vector<2x16x1xf32>
    %21 = arith.mulf %20, %19 : vector<2x16x1xf32>
    %22 = arith.addf %17, %21 : vector<2x16x1xf32>
    %c0_6 = arith.constant 0 : index
    %23 = memref.load %arg2[%c0_6] : memref<1xf32, #tpu.memory_space<smem>>
    %24 = arith.negf %22 : vector<2x16x1xf32>
    %25 = math.exp %24 : vector<2x16x1xf32>
    %cst_7 = arith.constant 1.000000e+00 : f32
    %26 = vector.broadcast %cst_7 : f32 to vector<2x16x1xf32>
    %27 = arith.addf %26, %25 : vector<2x16x1xf32>
    %28 = arith.divf %26, %27 : vector<2x16x1xf32>
    %29 = vector.broadcast %23 : f32 to vector<2x16x1xf32>
    %30 = arith.mulf %29, %28 : vector<2x16x1xf32>
    %cst_8 = arith.constant 1.000000e+00 : f32
    %31 = vector.broadcast %cst_8 : f32 to vector<2x16x1xf32>
    %32 = arith.addf %31, %30 : vector<2x16x1xf32>
    %c0_9 = arith.constant 0 : index
    %c0_10 = arith.constant 0 : index
    %c0_11 = arith.constant 0 : index
    %33 = vector.load %arg3[%c0_9, %c0_10, %c0_11] : memref<2x16x256xf32, #tpu.memory_space<vmem>>, vector<2x16x256xf32>
    %34 = vector.broadcast %32 : vector<2x16x1xf32> to vector<2x16x256xf32>
    %35 = arith.mulf %33, %34 : vector<2x16x256xf32>
    %c0_12 = arith.constant 0 : index
    %c0_13 = arith.constant 0 : index
    %c0_14 = arith.constant 0 : index
    %36 = vector.load %arg4[%c0_12, %c0_13, %c0_14] : memref<2x16x256xf32, #tpu.memory_space<vmem>>, vector<2x16x256xf32>
    tpu.vector_store %arg4[%c0_12, %c0_13, %c0_14], %35 {strides = array<i32>} : memref<2x16x256xf32, #tpu.memory_space<vmem>>, vector<2x16x256xf32>,
    return
  }
  func.func @transform_0(%arg0: i32) -> i32 {
    %c0_i32 = arith.constant 0 : i32
    %c0_i32_0 = arith.constant 0 : i32
    return %c0_i32 : i32
  }
  func.func @transform_1(%arg0: i32) -> i32 {
    %c0_i32 = arith.constant 0 : i32
    %c0_i32_0 = arith.constant 0 : i32
    return %c0_i32 : i32
  }
  func.func @transform_2(%arg0: i32) -> (i32, i32, i32) {
    %c0_i32 = arith.constant 0 : i32
    %c0_i32_0 = arith.constant 0 : i32
    %c0_i32_1 = arith.constant 0 : i32
    return %arg0, %c0_i32, %c0_i32_0 : i32, i32, i32
  }
  func.func @transform_3(%arg0: i32) -> (i32, i32, i32) {
    %c0_i32 = arith.constant 0 : i32
    %c0_i32_0 = arith.constant 0 : i32
    %c0_i32_1 = arith.constant 0 : i32
    return %arg0, %c0_i32, %c0_i32_0 : i32, i32, i32
  }
}

</mosaic_0001>

<bundles_post_ra>
// kernel: eca_forward.1
= control target key start
LH: loop header
LB: loop body
LE: loop exit
PB: predicated region body
PF: predicated region fallthrough
CT: control target
= control target key end

     0   :  { %s660_s0 = inlined_call_operand.vmem [shape: f32[3], index: 0, kind: input, shape index: {}]   ;;  %s661_s1 = inlined_call_operand.<no memory space> [shape: f32[1], index: 1, kind: input, shape index: {}]   ;;  %s662_s2 = inlined_call_operand.vmem [shape: f32[4,16,256], index: 2, kind: input, shape index: {}]   ;;  %s663_s3 = inlined_call_operand.vmem [shape: f32[4,16,256], index: 3, kind: output, shape index: {}]  }
   0x1   :  { %8 = sst [smem:[#allocation2]] %s661_s1 }
   0x2   :  { %9 = vsyncpa [#allocation4], 0  ;;  %s569_s14 = smov 0  }
   0x3 LB: > { %s456_s15 = sadd.s32 4294967295, %s542_s14   ;;  %p458_p0 = scmp.ge.s32.totalorder %s542_s14, 1  ;;  %s542_s14 = sphi %s569_s14, %s15_s14  }
   0x4   : > { %p114_p1 = scmp.lt.s32.totalorder %s542_s14, 3  ;;  %s127_s18 = sshll.u32 %s660_s0, 4  ;;  %s128_s18 = int_to_ptr.vmem [resolvable:$true] %s127_s18 }
   0x5   : > { %p584_p3 = scmp.eq.s32.totalorder %s456_s15, 0  ;;  %s517_s20 = scalar_lea.vmem %s128_s18, 16 }
   0x6   : > { %p580_p2 = pnand %p458_p0, %p114_p1  ;;  %p518_p6 = scmp.ne.s32.totalorder %s128_s18, %s517_s20 }
   0x7   : > { %p525_p10 = scmp.lt.s32.totalorder %s128_s18, %s128_s18  ;;  %p526_p11 = scmp.lt.s32.totalorder %s517_s20, %s517_s20 }
   0x8   : > { %p483_p4 = pneg %p580_p2 }
   0x9   : > { %p527_p12 = por %p526_p11, %p525_p10 }
   0xa   : > { %p484_p5 = pnand %p584_p3, %p483_p4 }
   0xc   : > { %p519_p7 = pneg %p484_p5 }
   0xe   : > { %p520_p8 = pnand %p519_p7, %p518_p6 }
  0x10   : > { %p521_p9 = pneg %p520_p8 }
  0x12   : > { %p528_p13 = pnand %p527_p12, %p521_p9 }
  0x14   : > { %531 = shalt.err (!%p528_p13)
}
  0x15   : > { %s544_s21 = smov [#allocation3]   ;;  %153 = sbr.rel (%p580_p2) target bundleno = 373 (0x175), region = 32 }
  0x16   : > { %486 = dma.vmem_to_smem (!%p484_p5), %s128_s18, 16, %s544_s21, [#allocation4]  }
  0x1c   : > { %537 = dma.done.wait (%p584_p3), [#allocation4], 16  }
  0x1d   : > { %539 = vsyncadd (%p584_p3), [#allocation4], 4294967280 }
  0x1e   : > { %159 = sfence }
  0x1f   : > { %s463_s22 = sshll.u32 %s456_s15, 1  ;;  %v545_v12 = vmov 0   ;;  %s469_s27 = sld [smem:[#allocation3 + $0x1]]  ;;  %vm223_vm0 = vcmask 1040384   ;;  %vm264_vm1 = vcmask 1046528   ;;  %vm297_vm2 = vcmask 1045504  }
  0x20   : > { %p181_p0 = scmp.lt.s32.totalorder %s463_s22, 3  ;;  %500 = vset.pattern.permute.xlu1 %v545_v12  ;;  %499 = vset.pattern.permute.xlu0 %v545_v12  ;;  %s470_s28 = sld [smem:[#allocation3 + $0x2]] }
  0x21   : > { %s240_s29 = sld [smem:[#allocation3]] }
  0x22   : > { %s667_s22 = smov (!%p181_p0, %s463_s22), 3  ;;  %s316_s30 = sld [smem:[#allocation2]] }
  0x23   : > { %s477_s23 = sshll.u32 %s667_s22, 5 }
  0x24   : > { %s185_s26 = scalar_lea.vmem %s662_s2, %s477_s23  ;;  %s192_s6 = scalar_lea.vmem %s663_s3, %s477_s23 }
  0x25   : > { %v606_v0 = vld [vmem:[%s185_s26 + $0x20] sm:$0xff]  ;;  %v608_v1 = vld [vmem:[%s185_s26 + $0x28] sm:$0xff]  ;;  %v616_v5 = vld [vmem:[%s185_s26 + $0x30] sm:$0xff]  ;;  %v251_v19 = vstv %s469_s27 }
  0x26   : > { %v610_v2 = vld [vmem:[%s185_s26] sm:$0xff]  ;;  %v208_v3 = vadd.f32 %v608_v1, %v606_v0  ;;  %v614_v4 = vld [vmem:[%s185_s26 + $0x8] sm:$0xff]  ;;  %v618_v6 = vld [vmem:[%s185_s26 + $0x38] sm:$0xff]  ;;  %v284_v24 = vstv %s470_s28 }
  0x27   : > { %v202_v7 = vadd.f32 %v614_v4, %v610_v2  ;;  %v622_v8 = vld [vmem:[%s185_s26 + $0x10] sm:$0xff]  ;;  %v624_v9 = vld [vmem:[%s185_s26 + $0x18] sm:$0xff]  ;;  %v211_v10 = vadd.f32 %v618_v6, %v616_v5  ;;  %v241_v28 = vstv %s240_s29 }
  0x28   : > { %209 = vadd.xlane.f32.xlu1 %v208_v3  ;;  %v205_v11 = vadd.f32 %v624_v9, %v622_v8 }
  0x29   : > { %203 = vadd.xlane.f32.xlu0 %v202_v7 }
  0x2c   : > { %212 = vadd.xlane.f32.xlu1 %v211_v10 }
  0x2d   : > { %206 = vadd.xlane.f32.xlu0 %v205_v11 }
  0xb5   : > { %v210_v13 = vpop.xlane.xlu1 %209 }
  0xb6   : > { %v217_v14 = vmul.f32 0.00390625, %v210_v13  ;;  %v204_v15 = vpop.xlane.xlu0 %203 }
  0xb7   : > { %v215_v16 = vmul.f32 0.00390625, %v204_v15 }
  0xb8   : > { %v227_v17 = vrot.slane %v217_v14, 7 }
  0xb9   : > { %v213_v18 = vpop.xlane.xlu1 %212  ;;  %v224_v21 = vrot.slane %v215_v16, 7 }
  0xba   : > { %v237_v20 = vsel %vm223_vm0, 0.0, %v227_v17  ;;  %v218_v22 = vmul.f32 0.00390625, %v213_v18  ;;  %v207_v23 = vpop.xlane.xlu0 %206 }
  0xbb   : > { %v255_v25 = vmul.f32 %v251_v19, %v237_v20  ;;  %v288_v26 = vmul.f32 %v284_v24, %v237_v20  ;;  %v216_v29 = vmul.f32 0.00390625, %v207_v23  ;;  %v236_v30 = vsel %vm223_vm0, 0.0, %v224_v21 }
  0xbc   : > { %v228_v27 = vrot.slane %v218_v22, 7  ;;  %v244_v37 = vmul.f32 %v241_v28, %v237_v20  ;;  %v252_v41 = vmul.f32 %v251_v19, %v236_v30  ;;  %v285_v49 = vmul.f32 %v284_v24, %v236_v30 }
  0xbd   : > { %v270_v33 = vrot.slane %v255_v25, 1  ;;  %v303_v38 = vrot.slane %v288_v26, 2  ;;  %v225_v40 = vrot.slane %v216_v29, 7  ;;  %v242_v3 = vmul.f32 %v241_v28, %v236_v30 }
  0xbe   : > { %v229_v31 = vsel %vm223_vm0, %v227_v17, %v228_v27  ;;  %v239_v32 = vsel %vm223_vm0, %v228_v27, 0.0  ;;  %v265_v60 = vrot.slane %v252_v41, 1  ;;  %v298_v12 = vrot.slane %v285_v49, 2 }
  0xbf   : > { %v256_v34 = vmul.f32 %v251_v19, %v229_v31  ;;  %v257_v35 = vmul.f32 %v251_v19, %v239_v32  ;;  %v289_v36 = vmul.f32 %v284_v24, %v229_v31  ;;  %v290_v39 = vmul.f32 %v284_v24, %v239_v32 }
  0xc0   : > { %v245_v45 = vmul.f32 %v241_v28, %v229_v31  ;;  %v226_v47 = vsel %vm223_vm0, %v224_v21, %v225_v40  ;;  %v238_v48 = vsel %vm223_vm0, %v225_v40, 0.0 }
  0xc1   : > { %v271_v42 = vrot.slane %v256_v34, 1  ;;  %v273_v43 = vrot.slane %v257_v35, 1  ;;  %v304_v44 = vrot.slane %v289_v36, 2  ;;  %v306_v46 = vrot.slane %v290_v39, 2 }
  0xc2   : > { %v253_v55 = vmul.f32 %v251_v19, %v226_v47  ;;  %v254_v57 = vmul.f32 %v251_v19, %v238_v48  ;;  %v286_v58 = vmul.f32 %v284_v24, %v226_v47  ;;  %v287_v59 = vmul.f32 %v284_v24, %v238_v48 }
  0xc3   : > { %v272_v50 = vsel %vm264_vm1, %v270_v33, %v271_v42  ;;  %v274_v51 = vsel %vm264_vm1, %v271_v42, %v273_v43  ;;  %v305_v54 = vsel %vm297_vm2, %v303_v38, %v304_v44  ;;  %v307_v56 = vsel %vm297_vm2, %v304_v44, %v306_v46 }
  0xc4   : > { %v281_v52 = vadd.f32 %v272_v50, %v244_v37  ;;  %v282_v53 = vadd.f32 %v274_v51, %v245_v45  ;;  %v266_v63 = vrot.slane %v253_v55, 1  ;;  %v268_v7 = vrot.slane %v254_v57, 1 }
  0xc5   : > { %v299_v10 = vrot.slane %v286_v58, 2  ;;  %v301_v11 = vrot.slane %v287_v59, 2  ;;  %v243_v14 = vmul.f32 %v241_v28, %v226_v47  ;;  %v341_v34 = vstv %s316_s30 }
  0xc6   : > { %v314_v61 = vadd.f32 %v305_v54, %v281_v52  ;;  %v315_v62 = vadd.f32 %v307_v56, %v282_v53  ;;  %v267_v15 = vsel %vm264_vm1, %v265_v60, %v266_v63  ;;  %v269_v16 = vsel %vm264_vm1, %v266_v63, %v268_v7 }
  0xc7   : > { %v279_v17 = vadd.f32 %v267_v15, %v242_v3  ;;  %v280_v19 = vadd.f32 %v269_v16, %v243_v14  ;;  %v300_v20 = vsel %vm297_vm2, %v298_v12, %v299_v10  ;;  %v302_v21 = vsel %vm297_vm2, %v299_v10, %v301_v11 }
  0xc8   : > { %v473_v13 = vmul.f32 -1.442695, %v314_v61  ;;  %v474_v18 = vmul.f32 -1.442695, %v315_v62 }
  0xc9   : > { %v312_v22 = vadd.f32 %v300_v20, %v279_v17  ;;  %v313_v23 = vadd.f32 %v302_v21, %v280_v19 }
  0xca   : > { %501 = vpow2.f32 %v473_v13 }
  0xcb   : > { %v471_v24 = vmul.f32 -1.442695, %v312_v22  ;;  %503 = vpow2.f32 %v474_v18  ;;  %v472_v25 = vmul.f32 -1.442695, %v313_v23 }
  0xcd   : > { %505 = vpow2.f32 %v471_v24 }
  0xce   : > { %507 = vpow2.f32 %v472_v25 }
  0xd4   : > { %v502_v26 = vpop.eup %501 }
  0xd5   : > { %v331_v27 = vadd.f32 1.0, %v502_v26  ;;  %v504_v28 = vpop.eup %503 }
  0xd6   : > { %v332_v33 = vadd.f32 1.0, %v504_v28 }
  0xd7   : > { %v506_v29 = vpop.eup %505  ;;  %509 = vrcp.f32 %v331_v27 }
  0xd8   : > { %v508_v30 = vpop.eup %507  ;;  %v329_v31 = vadd.f32 1.0, %v506_v29 }
  0xd9   : > { %v330_v32 = vadd.f32 1.0, %v508_v30 }
  0xda   : > { %511 = vrcp.f32 %v329_v31 }
  0xdb   : > { %513 = vrcp.f32 %v330_v32 }
  0xdc   : > { %515 = vrcp.f32 %v332_v33 }
  0xe1   : > { %v510_v35 = vpop.eup %509 }
  0xe2   : > { %v344_v42 = vmul.f32 %v510_v35, %v341_v34 }
  0xe4   : > { %v512_v36 = vpop.eup %511  ;;  %v348_v44 = vadd.f32 1.0, %v344_v42 }
  0xe5   : > { %v514_v37 = vpop.eup %513  ;;  %v342_v38 = vmul.f32 %v512_v36, %v341_v34 }
  0xe6   : > { %v343_v39 = vmul.f32 %v514_v37, %v341_v34  ;;  %v516_v43 = vpop.eup %515 }
  0xe7   : > { %v346_v40 = vadd.f32 1.0, %v342_v38  ;;  %v345_v45 = vmul.f32 %v516_v43, %v341_v34 }
  0xe8   : > { %v347_v41 = vadd.f32 1.0, %v343_v39 }
  0xe9   : > { %352 = vperm.xlu0 %499, %v346_v40   ;;  %v349_v46 = vadd.f32 1.0, %v345_v45 }
  0xea   : > { %357 = vperm.xlu1 %500, %v347_v41  }
  0xee   : > { %362 = vperm.xlu1 %500, %v348_v44  }
  0xf2   : > { %367 = vperm.xlu1 %500, %v349_v46  }
 0x168   : > { %v353_v47 = vpop.permute.xlu0 %352 }
 0x169   : > { %v370_v48 = vmul.f32 %v353_v47, %v610_v2  ;;  %v371_v49 = vmul.f32 %v353_v47, %v614_v4  ;;  %v358_v50 = vpop.permute.xlu1 %357 }
 0x16a   : > { %v372_v51 = vmul.f32 %v358_v50, %v622_v8  ;;  %v373_v52 = vmul.f32 %v358_v50, %v624_v9 }
 0x16b   : > { %378 = vst [vmem:[%s192_s6] sm:$0xff] %v370_v48  ;;  %379 = vst [vmem:[%s192_s6 + $0x8] sm:$0xff] %v371_v49 }
 0x16c   : > { %380 = vst [vmem:[%s192_s6 + $0x10] sm:$0xff] %v372_v51  ;;  %381 = vst [vmem:[%s192_s6 + $0x18] sm:$0xff] %v373_v52 }
 0x16d   : > { %v363_v53 = vpop.permute.xlu1 %362 }
 0x16e   : > { %v374_v54 = vmul.f32 %v363_v53, %v606_v0  ;;  %v375_v55 = vmul.f32 %v363_v53, %v608_v1 }
 0x170   : > { %382 = vst [vmem:[%s192_s6 + $0x20] sm:$0xff] %v374_v54  ;;  %383 = vst [vmem:[%s192_s6 + $0x28] sm:$0xff] %v375_v55 }
 0x171   : > { %v368_v56 = vpop.permute.xlu1 %367 }
 0x172   : > { %v376_v2 = vmul.f32 %v368_v56, %v616_v5  ;;  %v377_v4 = vmul.f32 %v368_v56, %v618_v6 }
 0x174   : > { %384 = vst [vmem:[%s192_s6 + $0x30] sm:$0xff] %v376_v2  ;;  %385 = vst [vmem:[%s192_s6 + $0x38] sm:$0xff] %v377_v4 }
 0x175 PF: > { %s15_s14 = sadd.s32 1, %s542_s14  }
 0x176   : > { %p12_p1 = scmp.ge.s32.totalorder %s15_s14, 4  }
 0x178   :  { %14 = sbr.rel (!%p12_p1) target bundleno = 3 (0x3), region = 67 }
 0x17f   :  { %410 = vsyncpa [#allocation4], 1 }
 0x180   :  { %412 = vsyncpa [#allocation4 + $0x1], 1 }

</bundles_post_ra>
